<compile_context>
chip_gen: v6e
topology: v6e:2x2x1
jax: 0.10.0
libtpu: 0.0.40
codegen_flags: <defaults>
</compile_context>

<pallas_src>
import jax
import jax.numpy as jnp
from jax.experimental import pallas as pl
from jax.experimental.pallas import tpu as pltpu


def _round_up(x, m):
    return ((x + m - 1) // m) * m


def _cdiv(a, b):
    return -(-a // b)


def _choose_row_tiling(n_rows, pout, tile_n_cap):
    """Pick (tile_n, n_tiles, n_pad): minimal row padding, VMEM-safe tile size, and
    >= 2 grid steps when there is enough work (so v7x's 2nd TensorCore isn't idle)."""
    rows8 = _round_up(max(n_rows, 1), 8)
    # VMEM heuristic: ~8 live / pipelined (tile_n, pout) f32 slabs; keep under ~12 MiB
    # (fits v5e's 16 MiB default scoped VMEM; v6e/v7x have >= 32 MiB scoped).
    budget_rows = max(8, (12 * 1024 * 1024) // (8 * 4 * max(pout, 128)))
    cap = max(8, min(_round_up(tile_n_cap, 8), _round_up(budget_rows, 8)))
    k = _cdiv(rows8, cap)
    if k == 1 and rows8 >= 16:
        k = 2  # shard rows across both TensorCores on v7x (harmless on v5e/v6e)
    tile_n = _round_up(_cdiv(rows8, k), 8)
    n_pad = tile_n * k
    return tile_n, k, n_pad


# ---------------- Pallas kernel ----------------

def _make_chebyshev_kernel(depth, compute_dtype):
    """Fused linear + whole-depth Chebyshev recursion + relu for one row tile.

    lap(x) = x - mean(x, axis=0) over ALL rows.  The column means of the Chebyshev
    terms satisfy m(T0)=m0, m(T1)=0, m(T_{k+1})=-m(T_{k-1}), i.e. they cycle through
    m0, 0, -m0, 0, ... — known at trace time.  This makes the recursion row-local
    (safe to tile / shard over rows) with zero per-iteration mean computation.
    """

    def kernel(x_ref, w_ref, b_ref, m0_ref, o_ref):
        x = x_ref[...].astype(compute_dtype)             # (tile_n, in_size)
        w = w_ref[...]                                   # (in_size, pout) compute_dtype
        # T0 = x @ W^T + b, f32 accumulation on the MXU.
        out_2 = jnp.dot(x, w, preferred_element_type=jnp.float32) + b_ref[...]
        # Single hoisted broadcast of mean(T0) to the tile shape (JAX does not CSE it).
        m0 = jnp.broadcast_to(m0_ref[...], out_2.shape)
        out_1 = out_2 - m0                               # T1 = lap(T0)
        out = out_1 + out_2

        t_prev, t_cur = out_2, out_1
        for i in range(depth):                           # trace-time unroll
            # mean(t_cur) = mean(T_{i+1}): 0 for even i, else +/- m0 (alternating).
            if i % 2 == 0:
                t_new = 2.0 * t_cur - t_prev             # no mean subtract at all
            elif ((i + 1) // 2) % 2 == 1:                # mean(t_cur) = -m0
                t_new = 2.0 * (t_cur + m0) - t_prev
            else:                                        # mean(t_cur) = +m0
                t_new = 2.0 * (t_cur - m0) - t_prev
            out = out + t_new
            t_prev, t_cur = t_cur, t_new

        o_ref[...] = jnp.maximum(out, 0.0)               # relu

    return kernel


# ---------------- wrapper ----------------

def chebyshev_forward(data, weight, bias, *, depth, tile_n=512,
                      compute_dtype=jnp.bfloat16):
    """data: (N, in_size) f32; weight: (out_size, in_size) (torch nn.Linear layout);
    bias: (out_size,) f32.  Returns relu-activated (N, out_size) f32."""
    data = jnp.asarray(data, jnp.float32)
    N, in_size = data.shape
    out_size = weight.shape[0]
    pout = _round_up(out_size, 128)

    tn, n_tiles, n_pad = _choose_row_tiling(N, pout, tile_n)

    # Row-only padding of x (no lane padding, no copy at all when N is already aligned).
    x = data if n_pad == N else jnp.pad(data, ((0, n_pad - N), (0, 0)))

    # Lane-pad W / bias (tiny, one-time); W pre-transposed; matmul operands in compute_dtype.
    w = jnp.zeros((in_size, pout), compute_dtype).at[:, :out_size].set(
        weight.T.astype(compute_dtype))
    b = jnp.zeros((1, pout), jnp.float32).at[0, :out_size].set(bias)

    # mean(T0) = mean(data) @ W^T + b (exact identity), computed once in f32 on the
    # UNPADDED data -- replaces the former column-mean pallas_call / 2nd HBM pass over x.
    m0_true = jnp.mean(data, axis=0, keepdims=True) @ weight.T.astype(jnp.float32) + bias
    m0 = jnp.zeros((1, pout), jnp.float32).at[:, :out_size].set(m0_true)

    out = pl.pallas_call(
        _make_chebyshev_kernel(depth, compute_dtype),
        out_shape=jax.ShapeDtypeStruct((n_pad, pout), jnp.float32),
        grid=(n_tiles,),
        in_specs=[
            pl.BlockSpec((tn, in_size), lambda i: (i, 0)),    # data row tile (no lane pad)
            pl.BlockSpec((in_size, pout), lambda i: (0, 0)),  # weight (resident)
            pl.BlockSpec((1, pout), lambda i: (0, 0)),        # bias
            pl.BlockSpec((1, pout), lambda i: (0, 0)),        # mean(T0)
        ],
        out_specs=pl.BlockSpec((tn, pout), lambda i: (i, 0)),
        compiler_params=pltpu.CompilerParams(
            dimension_semantics=("parallel",)),
    )(x, w, b, m0)

    # Skip the slice (extra HBM read+write) when no padding was added.
    if n_pad != N or pout != out_size:
        out = out[:N, :out_size]
    return out


# ---------------- pure-JAX reference (mirrors the torch forward) ----------------

def ref_forward(data, weight, bias, *, depth):
    lap = lambda t: t - jnp.mean(t, axis=0, keepdims=True)
    out_2 = data @ weight.T + bias
    out_1 = lap(out_2)
    out = out_1 + out_2
    for _ in range(depth):
        tmp = out_1
        out_1 = 2.0 * lap(out_1) - out_2
        out_2 = tmp
        out = out + out_1
    return jax.nn.relu(out)


if __name__ == "__main__":
    in_size, out_size, depth = 4, 8, 3
    N = 16

    key = jax.random.PRNGKey(0)
    kd, kw, kb = jax.random.split(key, 3)
    data = jax.random.normal(kd, (N, in_size), dtype=jnp.float32)
    weight = (0.3 * jax.random.normal(kw, (out_size, in_size))).astype(jnp.float32)
    bias = (0.1 * jax.random.normal(kb, (out_size,))).astype(jnp.float32)

    ref = ref_forward(data, weight, bias, depth=depth)

    # Exact f32-matmul path: tight structural/correctness check.
    out_f32 = jax.block_until_ready(
        chebyshev_forward(data, weight, bias, depth=depth, compute_dtype=jnp.float32))
    assert out_f32.shape == (N, out_size), out_f32.shape
    assert jnp.allclose(out_f32, ref, atol=1e-4, rtol=1e-4), \
        float(jnp.max(jnp.abs(out_f32 - ref)))

    # Default bf16-matmul path (MXU-native); looser tolerance for bf16 rounding.
    out_bf16 = jax.block_until_ready(
        chebyshev_forward(data, weight, bias, depth=depth))
    assert out_bf16.shape == (N, out_size), out_bf16.shape
    assert jnp.allclose(out_bf16, ref, atol=5e-2, rtol=5e-2), \
        float(jnp.max(jnp.abs(out_bf16 - ref)))

    print("KERNEL_OK")
</pallas_src>

<mosaic_0001>
module attributes {stable_mosaic.version = 11 : i64} {
  func.func @kernel(%arg0: i32, %arg1: memref<8x4xf32, #tpu.memory_space<vmem>>, %arg2: memref<4x128xf32, #tpu.memory_space<vmem>>, %arg3: memref<1x128xf32, #tpu.memory_space<vmem>>, %arg4: memref<1x128xf32, #tpu.memory_space<vmem>>, %arg5: memref<8x128xf32, #tpu.memory_space<vmem>>) attributes {dimension_semantics = [#tpu.dimension_semantics<parallel>], iteration_bounds = array<i64: 2>, scalar_prefetch = 0 : i64, scratch_operands = 0 : i64, tpu.core_type = #tpu.core_type<tc>, window_params = [{transform_indices = @transform_0, window_bounds = array<i64: 8, 4>}, {pipeline_mode = #tpu.pipeline_mode<synchronous>, transform_indices = @transform_1, window_bounds = array<i64: 4, 128>}, {pipeline_mode = #tpu.pipeline_mode<synchronous>, transform_indices = @transform_2, window_bounds = array<i64: 1, 128>}, {pipeline_mode = #tpu.pipeline_mode<synchronous>, transform_indices = @transform_3, window_bounds = array<i64: 1, 128>}, {transform_indices = @transform_4, window_bounds = array<i64: 8, 128>}]} {
    %c0 = arith.constant 0 : index
    %c0_0 = arith.constant 0 : index
    %0 = vector.load %arg1[%c0, %c0_0] : memref<8x4xf32, #tpu.memory_space<vmem>>, vector<8x4xf32>
    %c0_1 = arith.constant 0 : index
    %c0_2 = arith.constant 0 : index
    %1 = vector.load %arg2[%c0_1, %c0_2] : memref<4x128xf32, #tpu.memory_space<vmem>>, vector<4x128xf32>
    %cst = arith.constant dense<0.000000e+00> : vector<8x128xf32>
    %2 = tpu.matmul %0, %1, %cst {dimension_numbers = #tpu.dot_dimension_numbers<[1], [0], [0], [1], [0, 0, 1, 1], [], []>} : vector<8x4xf32>, vector<4x128xf32>, vector<8x128xf32> -> vector<8x128xf32>
    %c0_3 = arith.constant 0 : index
    %c0_4 = arith.constant 0 : index
    %3 = vector.load %arg3[%c0_3, %c0_4] : memref<1x128xf32, #tpu.memory_space<vmem>>, vector<1x128xf32>
    %4 = vector.broadcast %3 : vector<1x128xf32> to vector<8x128xf32>
    %5 = arith.addf %2, %4 : vector<8x128xf32>
    %c0_5 = arith.constant 0 : index
    %c0_6 = arith.constant 0 : index
    %6 = vector.load %arg4[%c0_5, %c0_6] : memref<1x128xf32, #tpu.memory_space<vmem>>, vector<1x128xf32>
    %7 = vector.shape_cast %6 : vector<1x128xf32> to vector<1x128xf32>
    %8 = vector.broadcast %7 : vector<1x128xf32> to vector<8x128xf32>
    %9 = arith.subf %5, %8 : vector<8x128xf32>
    %10 = arith.addf %9, %5 : vector<8x128xf32>
    %cst_7 = arith.constant 2.000000e+00 : f32
    %11 = vector.broadcast %cst_7 : f32 to vector<8x128xf32>
    %12 = arith.mulf %11, %9 : vector<8x128xf32>
    %13 = arith.subf %12, %5 : vector<8x128xf32>
    %14 = arith.addf %10, %13 : vector<8x128xf32>
    %15 = arith.addf %13, %8 : vector<8x128xf32>
    %cst_8 = arith.constant 2.000000e+00 : f32
    %16 = vector.broadcast %cst_8 : f32 to vector<8x128xf32>
    %17 = arith.mulf %16, %15 : vector<8x128xf32>
    %18 = arith.subf %17, %9 : vector<8x128xf32>
    %19 = arith.addf %14, %18 : vector<8x128xf32>
    %cst_9 = arith.constant 2.000000e+00 : f32
    %20 = vector.broadcast %cst_9 : f32 to vector<8x128xf32>
    %21 = arith.mulf %20, %18 : vector<8x128xf32>
    %22 = arith.subf %21, %13 : vector<8x128xf32>
    %23 = arith.addf %19, %22 : vector<8x128xf32>
    %cst_10 = arith.constant 0.000000e+00 : f32
    %24 = vector.broadcast %cst_10 : f32 to vector<8x128xf32>
    %25 = arith.maximumf %23, %24 : vector<8x128xf32>
    %c0_11 = arith.constant 0 : index
    %c0_12 = arith.constant 0 : index
    %26 = vector.load %arg5[%c0_11, %c0_12] : memref<8x128xf32, #tpu.memory_space<vmem>>, vector<8x128xf32>
    tpu.vector_store %arg5[%c0_11, %c0_12], %25 {strides = array<i32>} : memref<8x128xf32, #tpu.memory_space<vmem>>, vector<8x128xf32>,
    return
  }
  func.func @transform_0(%arg0: i32) -> (i32, i32) {
    %c0_i32 = arith.constant 0 : i32
    %c0_i32_0 = arith.constant 0 : i32
    return %arg0, %c0_i32 : i32, i32
  }
  func.func @transform_1(%arg0: i32) -> (i32, i32) {
    %c0_i32 = arith.constant 0 : i32
    %c0_i32_0 = arith.constant 0 : i32
    %c0_i32_1 = arith.constant 0 : i32
    return %c0_i32, %c0_i32_0 : i32, i32
  }
  func.func @transform_2(%arg0: i32) -> (i32, i32) {
    %c0_i32 = arith.constant 0 : i32
    %c0_i32_0 = arith.constant 0 : i32
    %c0_i32_1 = arith.constant 0 : i32
    return %c0_i32, %c0_i32_0 : i32, i32
  }
  func.func @transform_3(%arg0: i32) -> (i32, i32) {
    %c0_i32 = arith.constant 0 : i32
    %c0_i32_0 = arith.constant 0 : i32
    %c0_i32_1 = arith.constant 0 : i32
    return %c0_i32, %c0_i32_0 : i32, i32
  }
  func.func @transform_4(%arg0: i32) -> (i32, i32) {
    %c0_i32 = arith.constant 0 : i32
    %c0_i32_0 = arith.constant 0 : i32
    return %arg0, %c0_i32 : i32, i32
  }
}

</mosaic_0001>

<bundles_post_ra>
// kernel: tpu_custom_call.1
= control target key start
LH: loop header
LB: loop body
LE: loop exit
PB: predicated region body
PF: predicated region fallthrough
CT: control target
= control target key end

     0   :  { %9 = vsyncpa [#allocation3], 0  ;;  %s622_s0 = inlined_call_operand.vmem [shape: f32[16,4], index: 0, kind: input, shape index: {}]   ;;  %s623_s1 = inlined_call_operand.vmem [shape: f32[4,128], index: 1, kind: input, shape index: {}]   ;;  %s624_s2 = inlined_call_operand.vmem [shape: f32[1,128], index: 2, kind: input, shape index: {}]   ;;  %s625_s3 = inlined_call_operand.vmem [shape: f32[1,128], index: 3, kind: input, shape index: {}]   ;;  %s626_s4 = inlined_call_operand.hbm [shape: f32[16,128], index: 4, kind: output, shape index: {}]  }
   0x1   :  { %11 = vsyncpa [#allocation3 + $0x1], 0  ;;  %s526_s15 = smov 0   ;;  %s528_s16 = smov 0  }
   0x2   :  { %s530_s17 = smov 0   ;;  %s532_s18 = smov 0  }
   0x3 LB: > { %s547_s19 = sadd.s32 4294967295, %s496_s18   ;;  %s374_s20 = sadd.s32 4294967294, %s496_s18   ;;  %s496_s18 = sphi %s532_s18, %s632_s18   ;;  %s492_s17 = sphi %s530_s17, %s631_s17   ;;  %s488_s16 = sphi %s528_s16, %s630_s16   ;;  %s484_s15 = sphi %s526_s15, %s629_s15  }
   0x4   : > { %s551_s21 = sadd.s32 1, %s496_s18   ;;  %s113_s22 = sadd.s32 1, %s492_s17 }
   0x5   : > { %s110_s23 = ssub.s32 %s496_s18, %s551_s21  ;;  %p123_p0 = scmp.ne.s32.totalorder %s492_s17, %s488_s16 }
   0x6   : > { %p111_p1 = scmp.eq.s32.totalorder %s110_s23, 0  ;;  %p124_p2 = scmp.eq.s32.totalorder %s547_s19, 1 }
   0x7   : > { %p129_p3 = scmp.ne.s32.totalorder %s488_s16, %s484_s15  ;;  %p130_p4 = scmp.eq.s32.totalorder %s374_s20, 1 }
   0x8   : > { %s562_s24 = scalar_select %p111_p1, %s492_s17, %s113_s22  }
   0x9   : > { %p564_p5 = por %p124_p2, %p123_p0  ;;  %p568_p6 = por %p130_p4, %p129_p3 }
   0xa   : > { %p377_p7 = scmp.ge.s32.totalorder %s496_s18, 1  ;;  %p164_p8 = scmp.lt.s32.totalorder %s496_s18, 3 }
   0xc   : > { %p165_p9 = pnand %p377_p7, %p164_p8 }
   0xd   : > { %p189_p10 = scmp.lt.s32.totalorder (!%p165_p9), %s547_s19, 1  ;;  %s186_s12 = sand.u32 (!%p165_p9), 1, %s488_s16  }
   0xe   : > { %168 = sbr.rel (%p165_p9) target bundleno = 252 (0xfc), region = 36  ;;  %s378_s13 = sshll.u32 (!%p165_p9), %s186_s12, 3 }
   0xf   : > { %s385_s14 = sshll.u32 (!%p165_p9), %s547_s19, 7  ;;  %s188_s20 = scalar_lea.vmem (!%p165_p9), [#allocation2], %s378_s13 }
  0x10   : > { %s315_s22 = sshll.u32 (!%p165_p9), %s188_s20, 4  ;;  %s313_s28 = scalar_lea.hbm (!%p165_p9), %s626_s4, %s385_s14  ;;  %s316_s22 = int_to_ptr.vmem [resolvable:$true] %s315_s22 }
  0x11   : > { %s500_s5 = smov (!%p165_p9), [#allocation2]  }
  0x12   : > { %s440_s6 = sshll.u32 (!%p165_p9), %s500_s5, 4  ;;  %s441_s6 = int_to_ptr.vmem [resolvable:$false] %s440_s6 }
  0x13   : > { %v194_v0 = vld [vmem:[%s623_s1] sm:$0xf]  ;;  %vm206_vm0 = vcmask 1043456   ;;  %v498_v1 = vmov 0.0   ;;  %vm499_vm1 = vmmov 0   ;;  %s190_s29 = scalar_select %p189_p10, %s547_s19, 1 }
  0x14   : > { %390 = vmatprep.subr.mxu0 %v498_v1  ;;  %392 = vmatprep.mubr.msk.f32.mxu0 %vm499_vm1, %v498_v1  ;;  %vm202_vm2 = vcmask 31744   ;;  %v380_v3 = vld [vmem:[%s624_s2] ss:$0 sm:$0xff]  ;;  %s442_s19 = scalar_lea.vmem %s441_s6, 256  ;;  %p443_p0 = scmp.lt.s32.totalorder %s316_s22, %s441_s6 }
  0x15   : > { %391 = vmatpush3.msk.msra.mxu0 %vm206_vm0, %v194_v0  ;;  %s379_s30 = sshll.u32 %s190_s29, 3  ;;  %v383_v5 = vld [vmem:[%s625_s3] ss:$0 sm:$0xff]  ;;  %s302_s29 = scalar_lea.sflag [#allocation3], %s186_s12 }
  0x16   : > { %s192_s7 = scalar_lea.vmem %s622_s0, %s379_s30  ;;  %s436_s30 = scalar_lea.vmem %s316_s22, 128 }
  0x17   : > { %v193_v2 = vld [vmem:[%s192_s7] sm:$0xff]  ;;  %p437_p11 = scmp.ne.s32.totalorder %s316_s22, %s436_s30  ;;  %p444_p1 = scmp.lt.s32.totalorder %s442_s19, %s436_s30 }
  0x18   : > { %393 = vmatmul.mubr.msk.f32.vlgmr.msra.gmra.mxu0 %vm202_vm2, %v193_v2 }
  0x19   : > { %p438_p12 = pnand %p437_p11, %p564_p5  ;;  %p445_p2 = por %p444_p1, %p443_p0 }
  0x1b   : > { %p439_p13 = pneg %p438_p12 }
  0x1d   : > { %p446_p3 = pnand %p445_p2, %p439_p13 }
  0xd8   : > { %v276_v4 = vpop.f32.mrf.mxu0 }
  0xd9   : > { %v277_v6 = vadd.f32 %v380_v3, %v276_v4 }
  0xda   : > { %v394_v7 = vpop.f32.mrf.mxu0 }
  0xdb   : > { %v287_v8 = vsub.f32 %v277_v6, %v383_v5 }
  0xdd   : > { %v289_v9 = vmul.f32 2.0, %v287_v8  ;;  %v288_v13 = vadd.f32 %v287_v8, %v277_v6 }
  0xdf   : > { %v290_v10 = vsub.f32 %v289_v9, %v277_v6 }
  0xe1   : > { %v292_v11 = vadd.f32 %v383_v5, %v290_v10  ;;  %v291_v15 = vadd.f32 %v290_v10, %v288_v13 }
  0xe3   : > { %v293_v12 = vmul.f32 2.0, %v292_v11 }
  0xe5   : > { %v294_v14 = vsub.f32 %v293_v12, %v287_v8 }
  0xe7   : > { %v296_v16 = vmul.f32 2.0, %v294_v14  ;;  %v295_v17 = vadd.f32 %v294_v14, %v291_v15 }
  0xe9   : > { %v297_v18 = vsub.f32 %v296_v16, %v290_v10 }
  0xeb   : > { %v298_v19 = vadd.f32 %v297_v18, %v295_v17 }
  0xed   : > { %v299_v20 = vmax.f32 %v298_v19, 0.0 }
  0xef   : > { %300 = vst [vmem:[%s188_s20] sm:$0xff] %v299_v20 }
  0xf0   : > { %449 = shalt.err (!%p446_p3)
}
  0xf1   : > { %s450_s7 = scalar_lea.hbm %s313_s28, 128  ;;  %s454_s10 = scalar_lea.hbm %s626_s4, 256 }
  0xf2   : > { %p451_p4 = scmp.ne.s32.totalorder %s313_s28, %s450_s7  ;;  %p455_p9 = scmp.lt.s32.totalorder %s313_s28, %s626_s4 }
  0xf3   : > { %p456_p10 = scmp.lt.s32.totalorder %s454_s10, %s450_s7 }
  0xf4   : > { %p452_p7 = pnand %p451_p4, %p564_p5 }
  0xf5   : > { %p457_p11 = por %p456_p10, %p455_p9 }
  0xf6   : > { %p453_p8 = pneg %p452_p7 }
  0xf8   : > { %p458_p12 = pnand %p457_p11, %p453_p8 }
  0xfa   : > { %461 = shalt.err (!%p458_p12)
}
  0xfb   : > { %395 = dma.vmem_to_hbm [thread:$0]  (%p564_p5), %s316_s22, 128, %s313_s28, %s302_s29  }
  0xfc PF: > { %p401_p13 = scmp.ge.s32.totalorder %s496_s18, 2  ;;  %s327_s13 = sand.u32 1, %s484_s15  }
  0xfd   : > { %s328_s14 = scalar_lea.sflag [#allocation3], %s327_s13 }
  0xfe   : > { %p398_p0 = pnand %p401_p13, %p568_p6 }
 0x100   : > { %p399_p1 = pneg %p398_p0 }
 0x102   : > { %479 = dma.done.wait (%p399_p1), %s328_s14, 128  }
 0x103   : > { %481 = vsyncadd (%p399_p1), %s328_s14, 4294967168  ;;  %p14_p2 = scmp.ge.s32.totalorder %s551_s21, 4   ;;  %s629_s15 = smov %s488_s16 }
 0x104   : > { %s630_s16 = smov %s492_s17  ;;  %s631_s17 = smov %s562_s24 }
 0x105   : > { %s632_s18 = smov %s551_s21  ;;  %16 = sbr.rel (!%p14_p2) target bundleno = 3 (0x3), region = 71 }
 0x10a   :  { %333 = vsyncpa [#allocation3], 1 }
 0x10b   :  { %335 = vsyncpa [#allocation3 + $0x1], 1 }

</bundles_post_ra>
